<compile_context>
chip_gen: v5e
topology: v5e:2x2
jax: 0.10.0
libtpu: 0.0.40
codegen_flags: <defaults>
</compile_context>

<pallas_src>
import functools
import math

import jax
import jax.numpy as jnp
from jax import lax
from jax.experimental import pallas as pl
from jax.experimental.pallas import tpu as pltpu

EPS = 1e-5  # BatchNorm1d default


# ----------------------------------------------------------------------------
# Kernel
# ----------------------------------------------------------------------------
def _projector_kernel(x_ref, gb_ref, w1_hbm, w2_hbm, w3_hbm, o_ref,
                      a1_ref, a2_ref, wbuf_ref, sem_ref,
                      *, n1, n3, chunk, nbuf):
    """Fused 3x(Linear+BN[+ReLU]) with HBM-streamed weights.

    Weights arrive pre-packed as [n_chunks, in_dim, chunk] bf16 blocks, so the
    per-chunk matmul is a plain (B,K)x(K,chunk) contraction (no transpose) and
    every weight DMA is contiguous.
    """
    total = 2 * n1 + n3
    # Global fetch schedule in consumption order; prefetching ahead of the
    # compute pointer overlaps the next layer's first weight DMA with the
    # current layer's tail matmul + BN epilogue.
    schedule = ([(w1_hbm, c) for c in range(n1)]
                + [(w2_hbm, c) for c in range(n1)]
                + [(w3_hbm, c) for c in range(n3)])

    def fetch(g, slot):
        w_hbm, c = schedule[g]
        pltpu.make_async_copy(w_hbm.at[c], wbuf_ref.at[slot],
                              sem_ref.at[slot]).start()

    def wait(slot):
        # Shape-only descriptor: valid because EVERY chunk of every weight is
        # an identical [in_dim, chunk] bf16 block (asserted in the wrapper).
        pltpu.make_async_copy(w1_hbm.at[0], wbuf_ref.at[slot],
                              sem_ref.at[slot]).wait()

    # Prime the pipeline: keep (nbuf - 1) weight DMAs in flight.
    for g in range(min(nbuf - 1, total)):
        fetch(g, g % nbuf)

    gb = gb_ref[...]  # [4, in_dim] f32: g1, b1, g2, b2

    def bn_slab(h, c, gamma_row, beta_row, relu):
        # Training-mode BatchNorm1d (biased batch variance) on one [B, chunk]
        # column slab.  Stats are per-feature over the batch, so the slab is
        # self-contained.  Folded into a single FMA: y = h*s + t.
        mean = jnp.mean(h, axis=0, keepdims=True)
        d = h - mean
        var = jnp.mean(d * d, axis=0, keepdims=True)
        s = lax.rsqrt(var + EPS)
        cs, ce = c * chunk, (c + 1) * chunk
        if gamma_row is not None:
            s = s * gb[gamma_row:gamma_row + 1, cs:ce]
        t = (-mean) * s
        if beta_row is not None:
            t = t + gb[beta_row:beta_row + 1, cs:ce]
        y = h * s + t
        if relu:
            y = jnp.maximum(y, 0.0)
        return y

    def layer(lhs_bf16, out_ref, n_chunks, g0, gamma_row, beta_row, relu):
        for c in range(n_chunks):
            g = g0 + c
            slot = g % nbuf
            wait(slot)
            nxt = g + nbuf - 1
            if nxt < total:
                # Refill the slot consumed on the previous step.
                fetch(nxt, nxt % nbuf)
            h = jnp.dot(lhs_bf16, wbuf_ref[slot],
                        preferred_element_type=jnp.float32)   # [B, chunk] f32
            y = bn_slab(h, c, gamma_row, beta_row, relu)
            out_ref[:, c * chunk:(c + 1) * chunk] = y.astype(out_ref.dtype)
        return g0 + n_chunks

    x_bf = x_ref[...]                                   # already bf16
    g = layer(x_bf, a1_ref, n1, 0, 0, 1, True)          # Linear->BN(g1,b1)->ReLU
    g = layer(a1_ref[...], a2_ref, n1, g, 2, 3, True)   # Linear->BN(g2,b2)->ReLU
    g = layer(a2_ref[...], o_ref, n3, g, None, None, False)  # Linear->BN(no affine)


# ----------------------------------------------------------------------------
# Wrapper
# ----------------------------------------------------------------------------
def _pick_chunk(in_dim, out_dim, cap=1024):
    """Largest divisor of gcd(in,out) that is a multiple of 128 and <= cap,
    preferring multiples of 256 (v6e/v7x MXU width)."""
    g = math.gcd(in_dim, out_dim)
    divs = [c for c in range(128, min(g, cap) + 1, 128) if g % c == 0]
    assert divs, "in_dim and out_dim must share a multiple-of-128 divisor"
    m256 = [c for c in divs if c % 256 == 0]
    return max(m256) if m256 else max(divs)


def pack_params(params, *, chunk_cap=1024):
    """One-time host-side re-layout of PyTorch-layout weights [out,in] into
    contiguous [n_chunks, in_dim, chunk] bf16 blocks + stacked BN vectors."""
    in_dim = params["w1"].shape[1]
    out_dim = params["w3"].shape[0]
    chunk = _pick_chunk(in_dim, out_dim, chunk_cap)

    def pack(w):
        n, k = w.shape
        blocks = w.reshape(n // chunk, chunk, k)          # [nc, chunk, K]
        return jnp.transpose(blocks, (0, 2, 1)).astype(jnp.bfloat16)

    gb = jnp.stack([params["g1"], params["b1"], params["g2"], params["b2"]],
                   axis=0).astype(jnp.float32)
    return {"w1": pack(params["w1"]), "w2": pack(params["w2"]),
            "w3": pack(params["w3"]), "gb": gb}


def simsiam_projector(x, packed):
    """x: [B, in_dim]. packed: output of pack_params. Returns z: [B, out_dim]."""
    B = x.shape[0]
    n1, in_dim, chunk = packed["w1"].shape
    n3 = packed["w3"].shape[0]
    out_dim = n3 * chunk

    assert x.shape == (B, in_dim)
    assert packed["w2"].shape == (n1, in_dim, chunk)
    # All weight chunks must be identical [in_dim, chunk] blocks -- the
    # kernel's DMA-wait descriptor relies on it.
    assert packed["w3"].shape[1:] == (in_dim, chunk)
    assert packed["gb"].shape == (4, in_dim)
    assert B % 8 == 0, "B must be a multiple of 8 (16 recommended: bf16 sublanes)"
    assert in_dim % 128 == 0 and out_dim % 128 == 0

    total = 2 * n1 + n3
    nbuf = min(3, total)

    # Cast once outside the kernel: halves the input DMA, MXU still accumulates
    # in f32 and all BN math is f32.
    x_bf = x.astype(jnp.bfloat16)

    # VMEM budget from the actual buffers (+50% slack), capped for v7x (64 MiB).
    needed = (B * in_dim * 2            # x (bf16)
              + 4 * in_dim * 4          # gb
              + 2 * B * in_dim * 2      # a1, a2 (bf16)
              + B * out_dim * 4         # output (f32)
              + nbuf * in_dim * chunk * 2)  # weight ring buffer (bf16)
    vmem_limit = int(min(max(needed * 3 // 2 + (4 << 20), 32 << 20), 56 << 20))

    kernel = functools.partial(_projector_kernel, n1=n1, n3=n3, chunk=chunk,
                               nbuf=nbuf)

    return pl.pallas_call(
        kernel,
        out_shape=jax.ShapeDtypeStruct((B, out_dim), x.dtype),
        in_specs=[
            pl.BlockSpec((B, in_dim), lambda: (0, 0)),   # x (bf16, VMEM)
            pl.BlockSpec((4, in_dim), lambda: (0, 0)),   # stacked gamma/beta
            pl.BlockSpec(memory_space=pl.ANY),           # w1 blocks (HBM, streamed)
            pl.BlockSpec(memory_space=pl.ANY),           # w2 blocks
            pl.BlockSpec(memory_space=pl.ANY),           # w3 blocks
        ],
        out_specs=pl.BlockSpec((B, out_dim), lambda: (0, 0)),
        scratch_shapes=[
            pltpu.VMEM((B, in_dim), jnp.bfloat16),          # a1 (post BN+ReLU)
            pltpu.VMEM((B, in_dim), jnp.bfloat16),          # a2
            pltpu.VMEM((nbuf, in_dim, chunk), jnp.bfloat16),  # weight ring buffer
            pltpu.SemaphoreType.DMA((nbuf,)),
        ],
        compiler_params=pltpu.CompilerParams(vmem_limit_bytes=vmem_limit),
    )(x_bf, packed["gb"], packed["w1"], packed["w2"], packed["w3"])


# ----------------------------------------------------------------------------
# Params + pure-JAX reference
# ----------------------------------------------------------------------------
def init_params(key, input_dim, out_dim):
    ks = jax.random.split(key, 5)
    bound = 1.0 / math.sqrt(input_dim)
    u = lambda k, shape: jax.random.uniform(k, shape, jnp.float32, -bound, bound)
    return {
        # PyTorch Linear weight layout [out_features, in_features], bf16 once.
        "w1": u(ks[0], (input_dim, input_dim)).astype(jnp.bfloat16),
        "w2": u(ks[1], (input_dim, input_dim)).astype(jnp.bfloat16),
        "w3": u(ks[2], (out_dim, input_dim)).astype(jnp.bfloat16),
        # BatchNorm affine params (non-default values to exercise the path).
        "g1": 1.0 + 0.1 * jax.random.normal(ks[3], (input_dim,), jnp.float32),
        "b1": 0.1 * jax.random.normal(ks[4], (input_dim,), jnp.float32),
        "g2": jnp.ones((input_dim,), jnp.float32),
        "b2": jnp.zeros((input_dim,), jnp.float32),
    }


def _bn_train_ref(h, gamma=None, beta=None):
    mean = jnp.mean(h, axis=0, keepdims=True)
    var = jnp.mean((h - mean) ** 2, axis=0, keepdims=True)
    y = (h - mean) * lax.rsqrt(var + EPS)
    if gamma is not None:
        y = y * gamma
    if beta is not None:
        y = y + beta
    return y


def reference(x, params):
    w1 = params["w1"].astype(jnp.float32)
    w2 = params["w2"].astype(jnp.float32)
    w3 = params["w3"].astype(jnp.float32)
    h = x @ w1.T
    h = jnp.maximum(_bn_train_ref(h, params["g1"], params["b1"]), 0.0)
    h = h @ w2.T
    h = jnp.maximum(_bn_train_ref(h, params["g2"], params["b2"]), 0.0)
    h = h @ w3.T
    return _bn_train_ref(h)


# ----------------------------------------------------------------------------
if __name__ == "__main__":
    B, INPUT_DIM, OUT_DIM = 16, 128, 256  # small, lane/sublane-friendly shapes

    key = jax.random.PRNGKey(0)
    kx, kp = jax.random.split(key)
    x = jax.random.normal(kx, (B, INPUT_DIM), jnp.float32)
    params = init_params(kp, INPUT_DIM, OUT_DIM)
    packed = pack_params(params)          # one-time weight re-layout

    z = jax.jit(simsiam_projector)(x, packed)
    z = jax.block_until_ready(z)

    z_ref = reference(x, params)
    assert z.shape == (B, OUT_DIM)
    # bf16 matmul operands -> relaxed tolerance (BN keeps outputs unit-scale).
    err = float(jnp.max(jnp.abs(z - z_ref)))
    assert jnp.allclose(z, z_ref, atol=7.5e-2, rtol=5e-2), err

    print("KERNEL_OK")
</pallas_src>

<mosaic_0001>
module attributes {stable_mosaic.version = 11 : i64} {
  func.func @_projector_kernel(%arg0: memref<16x128xbf16, #tpu.memory_space<vmem>>, %arg1: memref<4x128xf32, #tpu.memory_space<vmem>>, %arg2: memref<1x128x128xbf16, #tpu.memory_space<any>>, %arg3: memref<1x128x128xbf16, #tpu.memory_space<any>>, %arg4: memref<2x128x128xbf16, #tpu.memory_space<any>>, %arg5: memref<16x256xf32, #tpu.memory_space<vmem>>, %arg6: memref<16x128xbf16, #tpu.memory_space<vmem>>, %arg7: memref<16x128xbf16, #tpu.memory_space<vmem>>, %arg8: memref<3x128x128xbf16, #tpu.memory_space<vmem>>, %arg9: memref<3x!tpu.dma_semaphore, #tpu.memory_space<semaphore_mem>>) attributes {dimension_semantics = [], scalar_prefetch = 0 : i64, scratch_operands = 4 : i64, tpu.core_type = #tpu.core_type<tc>} {
    %c0_i32 = arith.constant 0 : i32
    %c0_i32_0 = arith.constant 0 : i32
    %c0_i32_1 = arith.constant 0 : i32
    %c0_i32_2 = arith.constant 0 : i32
    %c0_i32_3 = arith.constant 0 : i32
    %0 = tpu.memref_slice %arg2[%c0_i32, %c0_i32_2, %c0_i32_3] : memref<1x128x128xbf16, #tpu.memory_space<any>> -> memref<1x128x128xbf16, #tpu.memory_space<any>>
    %1 = tpu.memref_squeeze %0 : memref<1x128x128xbf16, #tpu.memory_space<any>> -> memref<128x128xbf16, #tpu.memory_space<any>>
    %c0_i32_4 = arith.constant 0 : i32
    %c0_i32_5 = arith.constant 0 : i32
    %2 = tpu.memref_slice %arg8[%c0_i32_0, %c0_i32_4, %c0_i32_5] : memref<3x128x128xbf16, #tpu.memory_space<vmem>> -> memref<1x128x128xbf16, #tpu.memory_space<vmem>>
    %3 = tpu.memref_squeeze %2 : memref<1x128x128xbf16, #tpu.memory_space<vmem>> -> memref<128x128xbf16, #tpu.memory_space<vmem>>
    %4 = tpu.memref_slice %arg9[%c0_i32_1] : memref<3x!tpu.dma_semaphore, #tpu.memory_space<semaphore_mem>> -> memref<1x!tpu.dma_semaphore, #tpu.memory_space<semaphore_mem>>
    %5 = tpu.memref_squeeze %4 : memref<1x!tpu.dma_semaphore, #tpu.memory_space<semaphore_mem>> -> memref<!tpu.dma_semaphore, #tpu.memory_space<semaphore_mem>>
    tpu.enqueue_dma source(%1 : memref<128x128xbf16, #tpu.memory_space<any>>) target(%3 : memref<128x128xbf16, #tpu.memory_space<vmem>>) target_semaphore(%5 : memref<!tpu.dma_semaphore, #tpu.memory_space<semaphore_mem>>)
    %c0_i32_6 = arith.constant 0 : i32
    %c1_i32 = arith.constant 1 : i32
    %c1_i32_7 = arith.constant 1 : i32
    %c0_i32_8 = arith.constant 0 : i32
    %c0_i32_9 = arith.constant 0 : i32
    %6 = tpu.memref_slice %arg3[%c0_i32_6, %c0_i32_8, %c0_i32_9] : memref<1x128x128xbf16, #tpu.memory_space<any>> -> memref<1x128x128xbf16, #tpu.memory_space<any>>
    %7 = tpu.memref_squeeze %6 : memref<1x128x128xbf16, #tpu.memory_space<any>> -> memref<128x128xbf16, #tpu.memory_space<any>>
    %c0_i32_10 = arith.constant 0 : i32
    %c0_i32_11 = arith.constant 0 : i32
    %8 = tpu.memref_slice %arg8[%c1_i32, %c0_i32_10, %c0_i32_11] : memref<3x128x128xbf16, #tpu.memory_space<vmem>> -> memref<1x128x128xbf16, #tpu.memory_space<vmem>>
    %9 = tpu.memref_squeeze %8 : memref<1x128x128xbf16, #tpu.memory_space<vmem>> -> memref<128x128xbf16, #tpu.memory_space<vmem>>
    %10 = tpu.memref_slice %arg9[%c1_i32_7] : memref<3x!tpu.dma_semaphore, #tpu.memory_space<semaphore_mem>> -> memref<1x!tpu.dma_semaphore, #tpu.memory_space<semaphore_mem>>
    %11 = tpu.memref_squeeze %10 : memref<1x!tpu.dma_semaphore, #tpu.memory_space<semaphore_mem>> -> memref<!tpu.dma_semaphore, #tpu.memory_space<semaphore_mem>>
    tpu.enqueue_dma source(%7 : memref<128x128xbf16, #tpu.memory_space<any>>) target(%9 : memref<128x128xbf16, #tpu.memory_space<vmem>>) target_semaphore(%11 : memref<!tpu.dma_semaphore, #tpu.memory_space<semaphore_mem>>)
    %c0 = arith.constant 0 : index
    %c0_12 = arith.constant 0 : index
    %12 = vector.load %arg1[%c0, %c0_12] : memref<4x128xf32, #tpu.memory_space<vmem>>, vector<4x128xf32>
    %c0_13 = arith.constant 0 : index
    %c0_14 = arith.constant 0 : index
    %13 = vector.load %arg0[%c0_13, %c0_14] : memref<16x128xbf16, #tpu.memory_space<vmem>>, vector<16x128xbf16>
    %c0_i32_15 = arith.constant 0 : i32
    %c0_i32_16 = arith.constant 0 : i32
    %c0_i32_17 = arith.constant 0 : i32
    %c0_i32_18 = arith.constant 0 : i32
    %c0_i32_19 = arith.constant 0 : i32
    %14 = tpu.memref_slice %arg2[%c0_i32_15, %c0_i32_18, %c0_i32_19] : memref<1x128x128xbf16, #tpu.memory_space<any>> -> memref<1x128x128xbf16, #tpu.memory_space<any>>
    %15 = tpu.memref_squeeze %14 : memref<1x128x128xbf16, #tpu.memory_space<any>> -> memref<128x128xbf16, #tpu.memory_space<any>>
    %c0_i32_20 = arith.constant 0 : i32
    %c0_i32_21 = arith.constant 0 : i32
    %16 = tpu.memref_slice %arg8[%c0_i32_16, %c0_i32_20, %c0_i32_21] : memref<3x128x128xbf16, #tpu.memory_space<vmem>> -> memref<1x128x128xbf16, #tpu.memory_space<vmem>>
    %17 = tpu.memref_squeeze %16 : memref<1x128x128xbf16, #tpu.memory_space<vmem>> -> memref<128x128xbf16, #tpu.memory_space<vmem>>
    %18 = tpu.memref_slice %arg9[%c0_i32_17] : memref<3x!tpu.dma_semaphore, #tpu.memory_space<semaphore_mem>> -> memref<1x!tpu.dma_semaphore, #tpu.memory_space<semaphore_mem>>
    %19 = tpu.memref_squeeze %18 : memref<1x!tpu.dma_semaphore, #tpu.memory_space<semaphore_mem>> -> memref<!tpu.dma_semaphore, #tpu.memory_space<semaphore_mem>>
    tpu.wait_dma2 semaphore(%19 : memref<!tpu.dma_semaphore, #tpu.memory_space<semaphore_mem>>) src(%15 : memref<128x128xbf16, #tpu.memory_space<any>>) dst(%17 : memref<128x128xbf16, #tpu.memory_space<vmem>>)
    %c0_i32_22 = arith.constant 0 : i32
    %c2_i32 = arith.constant 2 : i32
    %c2_i32_23 = arith.constant 2 : i32
    %c0_i32_24 = arith.constant 0 : i32
    %c0_i32_25 = arith.constant 0 : i32
    %20 = tpu.memref_slice %arg4[%c0_i32_22, %c0_i32_24, %c0_i32_25] : memref<2x128x128xbf16, #tpu.memory_space<any>> -> memref<1x128x128xbf16, #tpu.memory_space<any>>
    %21 = tpu.memref_squeeze %20 : memref<1x128x128xbf16, #tpu.memory_space<any>> -> memref<128x128xbf16, #tpu.memory_space<any>>
    %c0_i32_26 = arith.constant 0 : i32
    %c0_i32_27 = arith.constant 0 : i32
    %22 = tpu.memref_slice %arg8[%c2_i32, %c0_i32_26, %c0_i32_27] : memref<3x128x128xbf16, #tpu.memory_space<vmem>> -> memref<1x128x128xbf16, #tpu.memory_space<vmem>>
    %23 = tpu.memref_squeeze %22 : memref<1x128x128xbf16, #tpu.memory_space<vmem>> -> memref<128x128xbf16, #tpu.memory_space<vmem>>
    %24 = tpu.memref_slice %arg9[%c2_i32_23] : memref<3x!tpu.dma_semaphore, #tpu.memory_space<semaphore_mem>> -> memref<1x!tpu.dma_semaphore, #tpu.memory_space<semaphore_mem>>
    %25 = tpu.memref_squeeze %24 : memref<1x!tpu.dma_semaphore, #tpu.memory_space<semaphore_mem>> -> memref<!tpu.dma_semaphore, #tpu.memory_space<semaphore_mem>>
    tpu.enqueue_dma source(%21 : memref<128x128xbf16, #tpu.memory_space<any>>) target(%23 : memref<128x128xbf16, #tpu.memory_space<vmem>>) target_semaphore(%25 : memref<!tpu.dma_semaphore, #tpu.memory_space<semaphore_mem>>)
    %c0_28 = arith.constant 0 : index
    %c0_29 = arith.constant 0 : index
    %c0_30 = arith.constant 0 : index
    %26 = vector.load %arg8[%c0_28, %c0_29, %c0_30] : memref<3x128x128xbf16, #tpu.memory_space<vmem>>, vector<1x128x128xbf16>
    %27 = vector.shape_cast %26 : vector<1x128x128xbf16> to vector<128x128xbf16>
    %cst = arith.constant dense<0.000000e+00> : vector<16x128xf32>
    %28 = tpu.matmul %13, %27, %cst {dimension_numbers = #tpu.dot_dimension_numbers<[1], [0], [0], [1], [0, 0, 1, 1], [], []>} : vector<16x128xbf16>, vector<128x128xbf16>, vector<16x128xf32> -> vector<16x128xf32>
    %cst_31 = arith.constant dense<0.000000e+00> : vector<128xf32>
    %29 = vector.multi_reduction <add>, %28, %cst_31 [0] : vector<16x128xf32> to vector<128xf32>
    %30 = vector.shape_cast %29 : vector<128xf32> to vector<1x128xf32>
    %cst_32 = arith.constant 1.600000e+01 : f32
    %31 = vector.broadcast %cst_32 : f32 to vector<1x128xf32>
    %32 = arith.divf %30, %31 : vector<1x128xf32>
    %33 = vector.broadcast %32 : vector<1x128xf32> to vector<16x128xf32>
    %34 = arith.subf %28, %33 : vector<16x128xf32>
    %35 = arith.mulf %34, %34 : vector<16x128xf32>
    %cst_33 = arith.constant dense<0.000000e+00> : vector<128xf32>
    %36 = vector.multi_reduction <add>, %35, %cst_33 [0] : vector<16x128xf32> to vector<128xf32>
    %37 = vector.shape_cast %36 : vector<128xf32> to vector<1x128xf32>
    %cst_34 = arith.constant 1.600000e+01 : f32
    %38 = vector.broadcast %cst_34 : f32 to vector<1x128xf32>
    %39 = arith.divf %37, %38 : vector<1x128xf32>
    %cst_35 = arith.constant 9.99999974E-6 : f32
    %40 = vector.broadcast %cst_35 : f32 to vector<1x128xf32>
    %41 = arith.addf %39, %40 : vector<1x128xf32>
    %42 = math.rsqrt %41 : vector<1x128xf32>
    %43 = vector.extract_strided_slice %12 {offsets = [0, 0], sizes = [1, 128], strides = [1, 1]} : vector<4x128xf32> to vector<1x128xf32>
    %44 = arith.mulf %42, %43 : vector<1x128xf32>
    %cst_36 = arith.constant 0.000000e+00 : f32
    %45 = vector.broadcast %cst_36 : f32 to vector<1x128xf32>
    %46 = arith.subf %45, %32 : vector<1x128xf32>
    %47 = arith.mulf %46, %44 : vector<1x128xf32>
    %48 = vector.extract_strided_slice %12 {offsets = [1, 0], sizes = [1, 128], strides = [1, 1]} : vector<4x128xf32> to vector<1x128xf32>
    %49 = arith.addf %47, %48 : vector<1x128xf32>
    %50 = vector.broadcast %44 : vector<1x128xf32> to vector<16x128xf32>
    %51 = arith.mulf %28, %50 : vector<16x128xf32>
    %52 = vector.broadcast %49 : vector<1x128xf32> to vector<16x128xf32>
    %53 = arith.addf %51, %52 : vector<16x128xf32>
    %cst_37 = arith.constant 0.000000e+00 : f32
    %54 = vector.broadcast %cst_37 : f32 to vector<16x128xf32>
    %55 = arith.maximumf %53, %54 : vector<16x128xf32>
    %56 = arith.truncf %55 : vector<16x128xf32> to vector<16x128xbf16>
    %c0_38 = arith.constant 0 : index
    %c0_39 = arith.constant 0 : index
    %57 = vector.load %arg6[%c0_38, %c0_39] : memref<16x128xbf16, #tpu.memory_space<vmem>>, vector<16x128xbf16>
    tpu.vector_store %arg6[%c0_38, %c0_39], %56 {strides = array<i32>} : memref<16x128xbf16, #tpu.memory_space<vmem>>, vector<16x128xbf16>,
    %c0_40 = arith.constant 0 : index
    %c0_41 = arith.constant 0 : index
    %58 = vector.load %arg6[%c0_40, %c0_41] : memref<16x128xbf16, #tpu.memory_space<vmem>>, vector<16x128xbf16>
    %c0_i32_42 = arith.constant 0 : i32
    %c1_i32_43 = arith.constant 1 : i32
    %c1_i32_44 = arith.constant 1 : i32
    %c0_i32_45 = arith.constant 0 : i32
    %c0_i32_46 = arith.constant 0 : i32
    %59 = tpu.memref_slice %arg2[%c0_i32_42, %c0_i32_45, %c0_i32_46] : memref<1x128x128xbf16, #tpu.memory_space<any>> -> memref<1x128x128xbf16, #tpu.memory_space<any>>
    %60 = tpu.memref_squeeze %59 : memref<1x128x128xbf16, #tpu.memory_space<any>> -> memref<128x128xbf16, #tpu.memory_space<any>>
    %c0_i32_47 = arith.constant 0 : i32
    %c0_i32_48 = arith.constant 0 : i32
    %61 = tpu.memref_slice %arg8[%c1_i32_43, %c0_i32_47, %c0_i32_48] : memref<3x128x128xbf16, #tpu.memory_space<vmem>> -> memref<1x128x128xbf16, #tpu.memory_space<vmem>>
    %62 = tpu.memref_squeeze %61 : memref<1x128x128xbf16, #tpu.memory_space<vmem>> -> memref<128x128xbf16, #tpu.memory_space<vmem>>
    %63 = tpu.memref_slice %arg9[%c1_i32_44] : memref<3x!tpu.dma_semaphore, #tpu.memory_space<semaphore_mem>> -> memref<1x!tpu.dma_semaphore, #tpu.memory_space<semaphore_mem>>
    %64 = tpu.memref_squeeze %63 : memref<1x!tpu.dma_semaphore, #tpu.memory_space<semaphore_mem>> -> memref<!tpu.dma_semaphore, #tpu.memory_space<semaphore_mem>>
    tpu.wait_dma2 semaphore(%64 : memref<!tpu.dma_semaphore, #tpu.memory_space<semaphore_mem>>) src(%60 : memref<128x128xbf16, #tpu.memory_space<any>>) dst(%62 : memref<128x128xbf16, #tpu.memory_space<vmem>>)
    %c1_i32_49 = arith.constant 1 : i32
    %c0_i32_50 = arith.constant 0 : i32
    %c0_i32_51 = arith.constant 0 : i32
    %c0_i32_52 = arith.constant 0 : i32
    %c0_i32_53 = arith.constant 0 : i32
    %65 = tpu.memref_slice %arg4[%c1_i32_49, %c0_i32_52, %c0_i32_53] : memref<2x128x128xbf16, #tpu.memory_space<any>> -> memref<1x128x128xbf16, #tpu.memory_space<any>>
    %66 = tpu.memref_squeeze %65 : memref<1x128x128xbf16, #tpu.memory_space<any>> -> memref<128x128xbf16, #tpu.memory_space<any>>
    %c0_i32_54 = arith.constant 0 : i32
    %c0_i32_55 = arith.constant 0 : i32
    %67 = tpu.memref_slice %arg8[%c0_i32_50, %c0_i32_54, %c0_i32_55] : memref<3x128x128xbf16, #tpu.memory_space<vmem>> -> memref<1x128x128xbf16, #tpu.memory_space<vmem>>
    %68 = tpu.memref_squeeze %67 : memref<1x128x128xbf16, #tpu.memory_space<vmem>> -> memref<128x128xbf16, #tpu.memory_space<vmem>>
    %69 = tpu.memref_slice %arg9[%c0_i32_51] : memref<3x!tpu.dma_semaphore, #tpu.memory_space<semaphore_mem>> -> memref<1x!tpu.dma_semaphore, #tpu.memory_space<semaphore_mem>>
    %70 = tpu.memref_squeeze %69 : memref<1x!tpu.dma_semaphore, #tpu.memory_space<semaphore_mem>> -> memref<!tpu.dma_semaphore, #tpu.memory_space<semaphore_mem>>
    tpu.enqueue_dma source(%66 : memref<128x128xbf16, #tpu.memory_space<any>>) target(%68 : memref<128x128xbf16, #tpu.memory_space<vmem>>) target_semaphore(%70 : memref<!tpu.dma_semaphore, #tpu.memory_space<semaphore_mem>>)
    %c1 = arith.constant 1 : index
    %c0_56 = arith.constant 0 : index
    %c0_57 = arith.constant 0 : index
    %71 = vector.load %arg8[%c1, %c0_56, %c0_57] : memref<3x128x128xbf16, #tpu.memory_space<vmem>>, vector<1x128x128xbf16>
    %72 = vector.shape_cast %71 : vector<1x128x128xbf16> to vector<128x128xbf16>
    %cst_58 = arith.constant dense<0.000000e+00> : vector<16x128xf32>
    %73 = tpu.matmul %58, %72, %cst_58 {dimension_numbers = #tpu.dot_dimension_numbers<[1], [0], [0], [1], [0, 0, 1, 1], [], []>} : vector<16x128xbf16>, vector<128x128xbf16>, vector<16x128xf32> -> vector<16x128xf32>
    %cst_59 = arith.constant dense<0.000000e+00> : vector<128xf32>
    %74 = vector.multi_reduction <add>, %73, %cst_59 [0] : vector<16x128xf32> to vector<128xf32>
    %75 = vector.shape_cast %74 : vector<128xf32> to vector<1x128xf32>
    %cst_60 = arith.constant 1.600000e+01 : f32
    %76 = vector.broadcast %cst_60 : f32 to vector<1x128xf32>
    %77 = arith.divf %75, %76 : vector<1x128xf32>
    %78 = vector.broadcast %77 : vector<1x128xf32> to vector<16x128xf32>
    %79 = arith.subf %73, %78 : vector<16x128xf32>
    %80 = arith.mulf %79, %79 : vector<16x128xf32>
    %cst_61 = arith.constant dense<0.000000e+00> : vector<128xf32>
    %81 = vector.multi_reduction <add>, %80, %cst_61 [0] : vector<16x128xf32> to vector<128xf32>
    %82 = vector.shape_cast %81 : vector<128xf32> to vector<1x128xf32>
    %cst_62 = arith.constant 1.600000e+01 : f32
    %83 = vector.broadcast %cst_62 : f32 to vector<1x128xf32>
    %84 = arith.divf %82, %83 : vector<1x128xf32>
    %cst_63 = arith.constant 9.99999974E-6 : f32
    %85 = vector.broadcast %cst_63 : f32 to vector<1x128xf32>
    %86 = arith.addf %84, %85 : vector<1x128xf32>
    %87 = math.rsqrt %86 : vector<1x128xf32>
    %88 = vector.extract_strided_slice %12 {offsets = [2, 0], sizes = [1, 128], strides = [1, 1]} : vector<4x128xf32> to vector<1x128xf32>
    %89 = arith.mulf %87, %88 : vector<1x128xf32>
    %cst_64 = arith.constant 0.000000e+00 : f32
    %90 = vector.broadcast %cst_64 : f32 to vector<1x128xf32>
    %91 = arith.subf %90, %77 : vector<1x128xf32>
    %92 = arith.mulf %91, %89 : vector<1x128xf32>
    %93 = vector.extract_strided_slice %12 {offsets = [3, 0], sizes = [1, 128], strides = [1, 1]} : vector<4x128xf32> to vector<1x128xf32>
    %94 = arith.addf %92, %93 : vector<1x128xf32>
    %95 = vector.broadcast %89 : vector<1x128xf32> to vector<16x128xf32>
    %96 = arith.mulf %73, %95 : vector<16x128xf32>
    %97 = vector.broadcast %94 : vector<1x128xf32> to vector<16x128xf32>
    %98 = arith.addf %96, %97 : vector<16x128xf32>
    %cst_65 = arith.constant 0.000000e+00 : f32
    %99 = vector.broadcast %cst_65 : f32 to vector<16x128xf32>
    %100 = arith.maximumf %98, %99 : vector<16x128xf32>
    %101 = arith.truncf %100 : vector<16x128xf32> to vector<16x128xbf16>
    %c0_66 = arith.constant 0 : index
    %c0_67 = arith.constant 0 : index
    %102 = vector.load %arg7[%c0_66, %c0_67] : memref<16x128xbf16, #tpu.memory_space<vmem>>, vector<16x128xbf16>
    tpu.vector_store %arg7[%c0_66, %c0_67], %101 {strides = array<i32>} : memref<16x128xbf16, #tpu.memory_space<vmem>>, vector<16x128xbf16>,
    %c0_68 = arith.constant 0 : index
    %c0_69 = arith.constant 0 : index
    %103 = vector.load %arg7[%c0_68, %c0_69] : memref<16x128xbf16, #tpu.memory_space<vmem>>, vector<16x128xbf16>
    %c0_i32_70 = arith.constant 0 : i32
    %c2_i32_71 = arith.constant 2 : i32
    %c2_i32_72 = arith.constant 2 : i32
    %c0_i32_73 = arith.constant 0 : i32
    %c0_i32_74 = arith.constant 0 : i32
    %104 = tpu.memref_slice %arg2[%c0_i32_70, %c0_i32_73, %c0_i32_74] : memref<1x128x128xbf16, #tpu.memory_space<any>> -> memref<1x128x128xbf16, #tpu.memory_space<any>>
    %105 = tpu.memref_squeeze %104 : memref<1x128x128xbf16, #tpu.memory_space<any>> -> memref<128x128xbf16, #tpu.memory_space<any>>
    %c0_i32_75 = arith.constant 0 : i32
    %c0_i32_76 = arith.constant 0 : i32
    %106 = tpu.memref_slice %arg8[%c2_i32_71, %c0_i32_75, %c0_i32_76] : memref<3x128x128xbf16, #tpu.memory_space<vmem>> -> memref<1x128x128xbf16, #tpu.memory_space<vmem>>
    %107 = tpu.memref_squeeze %106 : memref<1x128x128xbf16, #tpu.memory_space<vmem>> -> memref<128x128xbf16, #tpu.memory_space<vmem>>
    %108 = tpu.memref_slice %arg9[%c2_i32_72] : memref<3x!tpu.dma_semaphore, #tpu.memory_space<semaphore_mem>> -> memref<1x!tpu.dma_semaphore, #tpu.memory_space<semaphore_mem>>
    %109 = tpu.memref_squeeze %108 : memref<1x!tpu.dma_semaphore, #tpu.memory_space<semaphore_mem>> -> memref<!tpu.dma_semaphore, #tpu.memory_space<semaphore_mem>>
    tpu.wait_dma2 semaphore(%109 : memref<!tpu.dma_semaphore, #tpu.memory_space<semaphore_mem>>) src(%105 : memref<128x128xbf16, #tpu.memory_space<any>>) dst(%107 : memref<128x128xbf16, #tpu.memory_space<vmem>>)
    %c2 = arith.constant 2 : index
    %c0_77 = arith.constant 0 : index
    %c0_78 = arith.constant 0 : index
    %110 = vector.load %arg8[%c2, %c0_77, %c0_78] : memref<3x128x128xbf16, #tpu.memory_space<vmem>>, vector<1x128x128xbf16>
    %111 = vector.shape_cast %110 : vector<1x128x128xbf16> to vector<128x128xbf16>
    %cst_79 = arith.constant dense<0.000000e+00> : vector<16x128xf32>
    %112 = tpu.matmul %103, %111, %cst_79 {dimension_numbers = #tpu.dot_dimension_numbers<[1], [0], [0], [1], [0, 0, 1, 1], [], []>} : vector<16x128xbf16>, vector<128x128xbf16>, vector<16x128xf32> -> vector<16x128xf32>
    %cst_80 = arith.constant dense<0.000000e+00> : vector<128xf32>
    %113 = vector.multi_reduction <add>, %112, %cst_80 [0] : vector<16x128xf32> to vector<128xf32>
    %114 = vector.shape_cast %113 : vector<128xf32> to vector<1x128xf32>
    %cst_81 = arith.constant 1.600000e+01 : f32
    %115 = vector.broadcast %cst_81 : f32 to vector<1x128xf32>
    %116 = arith.divf %114, %115 : vector<1x128xf32>
    %117 = vector.broadcast %116 : vector<1x128xf32> to vector<16x128xf32>
    %118 = arith.subf %112, %117 : vector<16x128xf32>
    %119 = arith.mulf %118, %118 : vector<16x128xf32>
    %cst_82 = arith.constant dense<0.000000e+00> : vector<128xf32>
    %120 = vector.multi_reduction <add>, %119, %cst_82 [0] : vector<16x128xf32> to vector<128xf32>
    %121 = vector.shape_cast %120 : vector<128xf32> to vector<1x128xf32>
    %cst_83 = arith.constant 1.600000e+01 : f32
    %122 = vector.broadcast %cst_83 : f32 to vector<1x128xf32>
    %123 = arith.divf %121, %122 : vector<1x128xf32>
    %cst_84 = arith.constant 9.99999974E-6 : f32
    %124 = vector.broadcast %cst_84 : f32 to vector<1x128xf32>
    %125 = arith.addf %123, %124 : vector<1x128xf32>
    %126 = math.rsqrt %125 : vector<1x128xf32>
    %cst_85 = arith.constant 0.000000e+00 : f32
    %127 = vector.broadcast %cst_85 : f32 to vector<1x128xf32>
    %128 = arith.subf %127, %116 : vector<1x128xf32>
    %129 = arith.mulf %128, %126 : vector<1x128xf32>
    %130 = vector.broadcast %126 : vector<1x128xf32> to vector<16x128xf32>
    %131 = arith.mulf %112, %130 : vector<16x128xf32>
    %132 = vector.broadcast %129 : vector<1x128xf32> to vector<16x128xf32>
    %133 = arith.addf %131, %132 : vector<16x128xf32>
    %c0_86 = arith.constant 0 : index
    %c0_87 = arith.constant 0 : index
    %134 = vector.load %arg5[%c0_86, %c0_87] : memref<16x256xf32, #tpu.memory_space<vmem>>, vector<16x128xf32>
    tpu.vector_store %arg5[%c0_86, %c0_87], %133 {strides = array<i32>} : memref<16x256xf32, #tpu.memory_space<vmem>>, vector<16x128xf32>,
    %c0_i32_88 = arith.constant 0 : i32
    %c0_i32_89 = arith.constant 0 : i32
    %c0_i32_90 = arith.constant 0 : i32
    %c0_i32_91 = arith.constant 0 : i32
    %c0_i32_92 = arith.constant 0 : i32
    %135 = tpu.memref_slice %arg2[%c0_i32_88, %c0_i32_91, %c0_i32_92] : memref<1x128x128xbf16, #tpu.memory_space<any>> -> memref<1x128x128xbf16, #tpu.memory_space<any>>
    %136 = tpu.memref_squeeze %135 : memref<1x128x128xbf16, #tpu.memory_space<any>> -> memref<128x128xbf16, #tpu.memory_space<any>>
    %c0_i32_93 = arith.constant 0 : i32
    %c0_i32_94 = arith.constant 0 : i32
    %137 = tpu.memref_slice %arg8[%c0_i32_89, %c0_i32_93, %c0_i32_94] : memref<3x128x128xbf16, #tpu.memory_space<vmem>> -> memref<1x128x128xbf16, #tpu.memory_space<vmem>>
    %138 = tpu.memref_squeeze %137 : memref<1x128x128xbf16, #tpu.memory_space<vmem>> -> memref<128x128xbf16, #tpu.memory_space<vmem>>
    %139 = tpu.memref_slice %arg9[%c0_i32_90] : memref<3x!tpu.dma_semaphore, #tpu.memory_space<semaphore_mem>> -> memref<1x!tpu.dma_semaphore, #tpu.memory_space<semaphore_mem>>
    %140 = tpu.memref_squeeze %139 : memref<1x!tpu.dma_semaphore, #tpu.memory_space<semaphore_mem>> -> memref<!tpu.dma_semaphore, #tpu.memory_space<semaphore_mem>>
    tpu.wait_dma2 semaphore(%140 : memref<!tpu.dma_semaphore, #tpu.memory_space<semaphore_mem>>) src(%136 : memref<128x128xbf16, #tpu.memory_space<any>>) dst(%138 : memref<128x128xbf16, #tpu.memory_space<vmem>>)
    %c0_95 = arith.constant 0 : index
    %c0_96 = arith.constant 0 : index
    %c0_97 = arith.constant 0 : index
    %141 = vector.load %arg8[%c0_95, %c0_96, %c0_97] : memref<3x128x128xbf16, #tpu.memory_space<vmem>>, vector<1x128x128xbf16>
    %142 = vector.shape_cast %141 : vector<1x128x128xbf16> to vector<128x128xbf16>
    %cst_98 = arith.constant dense<0.000000e+00> : vector<16x128xf32>
    %143 = tpu.matmul %103, %142, %cst_98 {dimension_numbers = #tpu.dot_dimension_numbers<[1], [0], [0], [1], [0, 0, 1, 1], [], []>} : vector<16x128xbf16>, vector<128x128xbf16>, vector<16x128xf32> -> vector<16x128xf32>
    %cst_99 = arith.constant dense<0.000000e+00> : vector<128xf32>
    %144 = vector.multi_reduction <add>, %143, %cst_99 [0] : vector<16x128xf32> to vector<128xf32>
    %145 = vector.shape_cast %144 : vector<128xf32> to vector<1x128xf32>
    %cst_100 = arith.constant 1.600000e+01 : f32
    %146 = vector.broadcast %cst_100 : f32 to vector<1x128xf32>
    %147 = arith.divf %145, %146 : vector<1x128xf32>
    %148 = vector.broadcast %147 : vector<1x128xf32> to vector<16x128xf32>
    %149 = arith.subf %143, %148 : vector<16x128xf32>
    %150 = arith.mulf %149, %149 : vector<16x128xf32>
    %cst_101 = arith.constant dense<0.000000e+00> : vector<128xf32>
    %151 = vector.multi_reduction <add>, %150, %cst_101 [0] : vector<16x128xf32> to vector<128xf32>
    %152 = vector.shape_cast %151 : vector<128xf32> to vector<1x128xf32>
    %cst_102 = arith.constant 1.600000e+01 : f32
    %153 = vector.broadcast %cst_102 : f32 to vector<1x128xf32>
    %154 = arith.divf %152, %153 : vector<1x128xf32>
    %cst_103 = arith.constant 9.99999974E-6 : f32
    %155 = vector.broadcast %cst_103 : f32 to vector<1x128xf32>
    %156 = arith.addf %154, %155 : vector<1x128xf32>
    %157 = math.rsqrt %156 : vector<1x128xf32>
    %cst_104 = arith.constant 0.000000e+00 : f32
    %158 = vector.broadcast %cst_104 : f32 to vector<1x128xf32>
    %159 = arith.subf %158, %147 : vector<1x128xf32>
    %160 = arith.mulf %159, %157 : vector<1x128xf32>
    %161 = vector.broadcast %157 : vector<1x128xf32> to vector<16x128xf32>
    %162 = arith.mulf %143, %161 : vector<16x128xf32>
    %163 = vector.broadcast %160 : vector<1x128xf32> to vector<16x128xf32>
    %164 = arith.addf %162, %163 : vector<16x128xf32>
    %c0_105 = arith.constant 0 : index
    %c128 = arith.constant 128 : index
    %165 = vector.load %arg5[%c0_105, %c128] : memref<16x256xf32, #tpu.memory_space<vmem>>, vector<16x128xf32>
    tpu.vector_store %arg5[%c0_105, %c128], %164 {strides = array<i32>} : memref<16x256xf32, #tpu.memory_space<vmem>>, vector<16x128xf32>,
    return
  }
}

</mosaic_0001>

<bundles_post_ra>
// kernel: simsiam_projector.1
= control target key start
LH: loop header
LB: loop body
LE: loop exit
PB: predicated region body
PF: predicated region fallthrough
CT: control target
= control target key end

     0   :  { %10 = vsyncpa [#allocation7], 0  ;;  %s974_s23 = smov [#allocation4]   ;;  %s975_s30 = smov [#allocation4 + $0x40]   ;;  %s1061_s0 = inlined_call_operand.vmem [shape: bf16[16,128], index: 0, kind: input, shape index: {}]   ;;  %s1062_s1 = inlined_call_operand.vmem [shape: f32[4,128], index: 1, kind: input, shape index: {}]   ;;  %s1063_s2 = inlined_call_operand.hbm [shape: bf16[1,128,128], index: 2, kind: input, shape index: {}]   ;;  %s1064_s3 = inlined_call_operand.hbm [shape: bf16[1,128,128], index: 3, kind: input, shape index: {}]   ;;  %s1065_s4 = inlined_call_operand.hbm [shape: bf16[2,128,128], index: 4, kind: input, shape index: {}]   ;;  %s1066_s5 = inlined_call_operand.hbm [shape: f32[16,256], index: 5, kind: output, shape index: {}]  }
   0x1   :  { %s22_s20 = sshll.u32 %s1063_s2, 4  ;;  %v1017_v0 = vld [vmem:[%s1062_s1] sm:$0xf]  ;;  %s1019_s24 = sshll.u32 %s974_s23, 4  ;;  %v782_v2 = vld [vmem:[%s1061_s0] sm:$0xf0]  ;;  %s23_s20 = int_to_ptr.hbm [resolvable:$true] %s22_s20  ;;  %s25_s24 = int_to_ptr.vmem [resolvable:$true] %s1019_s24 }
   0x2   :  { %v641_v1 = vld [vmem:[%s1061_s0] sm:$0xf]  ;;  %s37_s1 = sshll.u32 %s1064_s3, 4  ;;  %s39_s6 = sshll.u32 %s975_s30, 4  ;;  %s38_s1 = int_to_ptr.hbm [resolvable:$true] %s37_s1  ;;  %s40_s6 = int_to_ptr.vmem [resolvable:$true] %s39_s6 }
   0x3   :  { %27 = dma.hbm_to_vmem [thread:$0]  %s23_s20, 1024, %s25_s24, [#allocation5] }
   0x4   :  { %42 = dma.hbm_to_vmem [thread:$0]  %s38_s1, 1024, %s40_s6, [#allocation5 + $0x1] }
   0x5   :  { %964 = dma.done.wait [#allocation5], 1024 }
   0x6   :  { %965 = vsyncadd [#allocation5], 4294966272  ;;  %s59_s9 = sshll.u32 %s1065_s4, 4  ;;  %s976_s0 = smov [#allocation4 + $0x80]   ;;  %v642_v11 = vor.u32 %v782_v2, %v641_v1  ;;  %v977_v12 = vmov 16.0   ;;  %v191_v51 = vrot.slane %v1017_v0, 1  ;;  %s60_s9 = int_to_ptr.hbm [resolvable:$true] %s59_s9 }
   0x7   :  { %s61_s10 = sshll.u32 %s976_s0, 4  ;;  %834 = vrcp.f32 %v977_v12  ;;  %s62_s10 = int_to_ptr.vmem [resolvable:$true] %s61_s10 }
   0x8   :  { %64 = dma.hbm_to_vmem [thread:$0]  %s60_s9, 1024, %s62_s10, [#allocation5 + $0x2] }
   0x9   :  { %v790_v3 = vld [vmem:[#allocation4 + $0x38] sm:$0xff]  ;;  %v789_v4 = vld [vmem:[#allocation4 + $0x30] sm:$0xff]  ;;  %v788_v5 = vld [vmem:[#allocation4 + $0x28] sm:$0xff] }
   0xa   :  { %135 = vmatpush.bf16.msra.mxu0 %v790_v3  ;;  %v787_v6 = vld [vmem:[#allocation4 + $0x20] sm:$0xff]  ;;  %v786_v7 = vld [vmem:[#allocation4 + $0x18] sm:$0xff]  ;;  %v785_v8 = vld [vmem:[#allocation4 + $0x10] sm:$0xff] }
   0xb   :  { %v784_v9 = vld [vmem:[#allocation4 + $0x8] sm:$0xff]  ;;  %v783_v10 = vld [vmem:[#allocation4] sm:$0xff] }
   0xd   :  { %v835_v14 = vpop.eup %834 }
   0xe   :  { %136 = vmatpush.bf16.msra.mxu0 %v789_v4  ;;  %v157_v15 = vmul.f32 16.0, %v835_v14  ;;  %vm161_vm0 = vweird.f32 %v835_v14 }
  0x10   :  { %v158_v17 = vsub.f32 1.0, %v157_v15 }
  0x12   :  { %137 = vmatpush.bf16.msra.mxu0 %v788_v5  ;;  %v159_v20 = vmul.f32 %v835_v14, %v158_v17 }
  0x14   :  { %v160_v23 = vadd.f32 %v835_v14, %v159_v20 }
  0x16   :  { %138 = vmatpush.bf16.msra.mxu0 %v787_v6  ;;  %v1036_v26 = vsel %vm161_vm0, %v835_v14, %v160_v23 }
  0x1a   :  { %139 = vmatpush.bf16.msra.mxu0 %v786_v7 }
  0x1e   :  { %140 = vmatpush.bf16.msra.mxu0 %v785_v8 }
  0x22   :  { %141 = vmatpush.bf16.msra.mxu0 %v784_v9 }
  0x26   :  { %142 = vmatpush.bf16.msra.mxu0 %v783_v10 }
  0x29   :  { %143 = vmatmul.bf16.vlgmr.msra.gmra.mxu0 %v642_v11 }
  0xa6   :  { %v144_v13 = vpop.f32.mrf.mxu0 }
  0xae   :  { %v146_v16 = vpop.f32.mrf.mxu0 }
  0xaf   :  { %v149_v18 = vadd.f32 %v146_v16, %v144_v13 }
  0xb1   :  { %v150_v19 = vrot.slane %v149_v18, 4 }
  0xb3   :  { %v151_v21 = vadd.f32 %v150_v19, %v149_v18 }
  0xb5   :  { %v152_v22 = vrot.slane %v151_v21, 2 }
  0xb7   :  { %v153_v24 = vadd.f32 %v152_v22, %v151_v21 }
  0xb9   :  { %v154_v25 = vrot.slane %v153_v24, 1 }
  0xbb   :  { %v155_v27 = vadd.f32 %v154_v25, %v153_v24 }
  0xbd   :  { %v163_v28 = vmul.f32 %v1036_v26, %v155_v27 }
  0xbf   :  { %v164_v29 = vsub.f32 %v144_v13, %v163_v28  ;;  %v165_v30 = vsub.f32 %v146_v16, %v163_v28  ;;  %v188_v50 = vsub.f32 0.0, %v163_v28 }
  0xc1   :  { %v166_v31 = vmul.f32 %v164_v29, %v164_v29  ;;  %v167_v32 = vmul.f32 %v165_v30, %v165_v30 }
  0xc3   :  { %v168_v33 = vadd.f32 %v167_v32, %v166_v31 }
  0xc5   :  { %v169_v34 = vrot.slane %v168_v33, 4 }
  0xc7   :  { %v170_v35 = vadd.f32 %v169_v34, %v168_v33 }
  0xc9   :  { %v171_v36 = vrot.slane %v170_v35, 2 }
  0xcb   :  { %v172_v37 = vadd.f32 %v171_v36, %v170_v35 }
  0xcd   :  { %v173_v38 = vrot.slane %v172_v37, 1 }
  0xcf   :  { %v174_v39 = vadd.f32 %v173_v38, %v172_v37 }
  0xd1   :  { %v175_v40 = vmul.f32 %v174_v39, %v1036_v26 }
  0xd3   :  { %v176_v41 = vadd.f32 1e-05, %v175_v40 }
  0xd5   :  { %836 = vrsqrt.f32 %v176_v41  ;;  %vm183_vm2 = vweird.f32 %v176_v41 }
  0xdb   :  { %v837_v42 = vpop.eup %836 }
  0xdc   :  { %v178_v43 = vmul.f32 %v837_v42, %v176_v41  ;;  %vm184_vm1 = vweird.f32 %v837_v42 }
  0xdd   :  { %vm185_vm3 = vmor %vm183_vm2, %vm184_vm1 }
  0xde   :  { %v179_v44 = vmul.f32 %v837_v42, %v178_v43 }
  0xe0   :  { %v180_v45 = vmul.f32 0.5, %v179_v44 }
  0xe2   :  { %v181_v46 = vsub.f32 1.5, %v180_v45 }
  0xe4   :  { %v182_v47 = vmul.f32 %v837_v42, %v181_v46 }
  0xe6   :  { %v186_v48 = vsel %vm185_vm3, %v837_v42, %v182_v47 }
  0xe7   :  { %v187_v49 = vmul.f32 %v186_v48, %v1017_v0 }
  0xe9   :  { %v189_v52 = vmul.f32 %v188_v50, %v187_v49  ;;  %v194_v53 = vperm.slane %v187_v49, 0 }
  0xeb   :  { %v193_v54 = vadd.f32 %v191_v51, %v189_v52  ;;  %v195_v55 = vmul.f32 %v194_v53, %v144_v13  ;;  %v196_v56 = vmul.f32 %v194_v53, %v146_v16 }
  0xed   :  { %v197_v57 = vperm.slane %v193_v54, 0 }
  0xef   :  { %v198_v58 = vadd.f32 %v197_v57, %v195_v55  ;;  %v199_v59 = vadd.f32 %v197_v57, %v196_v56 }
  0xf1   :  { %v200_v60 = vmax.f32 %v198_v58, 0.0  ;;  %v201_v61 = vmax.f32 %v199_v59, 0.0 }
  0xf3   :  { %v820_v62 = vpack.c.bf16 %v201_v61, %v200_v60 }
  0xf5   :  { %821 = vst [vmem:[#allocation2] sm:$0xff] %v820_v62  }
  0xfc   :  { %v677_v63 = vld [vmem:[#allocation2] sm:$0xf]  ;;  %v791_v1 = vld [vmem:[#allocation2] sm:$0xf0] }
  0xfd   :  { %966 = dma.done.wait [#allocation5 + $0x1], 1024 }
  0xfe   :  { %967 = vsyncadd [#allocation5 + $0x1], 4294966272  ;;  %s210_s12 = scalar_lea.hbm %s1065_s4, 64  ;;  %v678_v10 = vor.u32 %v791_v1, %v677_v63 }
  0xff   :  { %s218_s13 = sshll.u32 %s210_s12, 4  ;;  %s219_s13 = int_to_ptr.hbm [resolvable:$true] %s218_s13 }
 0x100   :  { %223 = dma.hbm_to_vmem [thread:$0]  %s219_s13, 1024, %s25_s24, [#allocation5] }
 0x101   :  { %v799_v2 = vld [vmem:[#allocation4 + $0x78] sm:$0xff]  ;;  %v798_v3 = vld [vmem:[#allocation4 + $0x70] sm:$0xff]  ;;  %v797_v4 = vld [vmem:[#allocation4 + $0x68] sm:$0xff] }
 0x102   :  { %294 = vmatpush.bf16.msra.mxu1 %v799_v2  ;;  %v796_v5 = vld [vmem:[#allocation4 + $0x60] sm:$0xff]  ;;  %v795_v6 = vld [vmem:[#allocation4 + $0x58] sm:$0xff]  ;;  %v794_v7 = vld [vmem:[#allocation4 + $0x50] sm:$0xff] }
 0x103   :  { %v793_v8 = vld [vmem:[#allocation4 + $0x48] sm:$0xff]  ;;  %v792_v9 = vld [vmem:[#allocation4 + $0x40] sm:$0xff] }
 0x106   :  { %295 = vmatpush.bf16.msra.mxu1 %v798_v3 }
 0x10a   :  { %296 = vmatpush.bf16.msra.mxu1 %v797_v4 }
 0x10e   :  { %297 = vmatpush.bf16.msra.mxu1 %v796_v5 }
 0x112   :  { %298 = vmatpush.bf16.msra.mxu1 %v795_v6 }
 0x116   :  { %299 = vmatpush.bf16.msra.mxu1 %v794_v7 }
 0x11a   :  { %300 = vmatpush.bf16.msra.mxu1 %v793_v8 }
 0x11e   :  { %301 = vmatpush.bf16.msra.mxu1 %v792_v9 }
 0x121   :  { %302 = vmatmul.bf16.vlgmr.msra.gmra.mxu1 %v678_v10 }
 0x19e   :  { %v303_v11 = vpop.f32.mrf.mxu1 }
 0x1a6   :  { %v305_v12 = vpop.f32.mrf.mxu1 }
 0x1a7   :  { %v308_v13 = vadd.f32 %v305_v12, %v303_v11 }
 0x1a9   :  { %v309_v14 = vrot.slane %v308_v13, 4 }
 0x1ab   :  { %v310_v15 = vadd.f32 %v309_v14, %v308_v13 }
 0x1ad   :  { %v311_v16 = vrot.slane %v310_v15, 2 }
 0x1af   :  { %v312_v17 = vadd.f32 %v311_v16, %v310_v15 }
 0x1b1   :  { %v313_v18 = vrot.slane %v312_v17, 1 }
 0x1b3   :  { %v314_v19 = vadd.f32 %v313_v18, %v312_v17 }
 0x1b5   :  { %v315_v20 = vmul.f32 %v314_v19, %v1036_v26 }
 0x1b7   :  { %v316_v21 = vsub.f32 %v303_v11, %v315_v20  ;;  %v317_v22 = vsub.f32 %v305_v12, %v315_v20  ;;  %v340_v43 = vsub.f32 0.0, %v315_v20 }
 0x1b9   :  { %v318_v23 = vmul.f32 %v316_v21, %v316_v21  ;;  %v319_v24 = vmul.f32 %v317_v22, %v317_v22 }
 0x1bb   :  { %v320_v25 = vadd.f32 %v319_v24, %v318_v23 }
 0x1bd   :  { %v321_v27 = vrot.slane %v320_v25, 4 }
 0x1bf   :  { %v322_v28 = vadd.f32 %v321_v27, %v320_v25 }
 0x1c1   :  { %v323_v29 = vrot.slane %v322_v28, 2 }
 0x1c3   :  { %v324_v30 = vadd.f32 %v323_v29, %v322_v28 }
 0x1c5   :  { %v325_v31 = vrot.slane %v324_v30, 1 }
 0x1c7   :  { %v326_v32 = vadd.f32 %v325_v31, %v324_v30 }
 0x1c9   :  { %v327_v33 = vmul.f32 %v326_v32, %v1036_v26 }
 0x1cb   :  { %v328_v34 = vadd.f32 1e-05, %v327_v33 }
 0x1cd   :  { %838 = vrsqrt.f32 %v328_v34  ;;  %vm335_vm5 = vweird.f32 %v328_v34 }
 0x1d3   :  { %v839_v35 = vpop.eup %838 }
 0x1d4   :  { %v330_v36 = vmul.f32 %v839_v35, %v328_v34  ;;  %vm336_vm4 = vweird.f32 %v839_v35 }
 0x1d5   :  { %vm337_vm6 = vmor %vm335_vm5, %vm336_vm4 }
 0x1d6   :  { %v331_v37 = vmul.f32 %v839_v35, %v330_v36 }
 0x1d8   :  { %v332_v38 = vmul.f32 0.5, %v331_v37 }
 0x1da   :  { %v333_v39 = vsub.f32 1.5, %v332_v38 }
 0x1dc   :  { %v334_v40 = vmul.f32 %v839_v35, %v333_v39 }
 0x1de   :  { %v338_v41 = vsel %vm337_vm6, %v839_v35, %v334_v40 }
 0x1df   :  { %v339_v42 = vmul.f32 %v338_v41, %v1017_v0 }
 0x1e1   :  { %v341_v44 = vmul.f32 %v340_v43, %v339_v42  ;;  %v343_v45 = vperm.slane %v339_v42, 2 }
 0x1e3   :  { %v342_v46 = vadd.f32 %v341_v44, %v191_v51  ;;  %v344_v47 = vmul.f32 %v343_v45, %v303_v11  ;;  %v345_v48 = vmul.f32 %v343_v45, %v305_v12 }
 0x1e5   :  { %v346_v49 = vperm.slane %v342_v46, 2 }
 0x1e7   :  { %v347_v50 = vadd.f32 %v346_v49, %v344_v47  ;;  %v348_v52 = vadd.f32 %v346_v49, %v345_v48 }
 0x1e9   :  { %v349_v53 = vmax.f32 %v347_v50, 0.0  ;;  %v350_v54 = vmax.f32 %v348_v52, 0.0 }
 0x1eb   :  { %v825_v55 = vpack.c.bf16 %v350_v54, %v349_v53 }
 0x1ed   :  { %826 = vst [vmem:[#allocation3] sm:$0xff] %v825_v55  }
 0x1f4   :  { %v713_v56 = vld [vmem:[#allocation3] sm:$0xf]  ;;  %v800_v57 = vld [vmem:[#allocation3] sm:$0xf0] }
 0x1f5   :  { %968 = dma.done.wait [#allocation5 + $0x2], 1024 }
 0x1f6   :  { %969 = vsyncadd [#allocation5 + $0x2], 4294966272  ;;  %v808_v58 = vld [vmem:[#allocation4 + $0xb8] sm:$0xff]  ;;  %v807_v59 = vld [vmem:[#allocation4 + $0xb0] sm:$0xff]  ;;  %v714_v1 = vor.u32 %v800_v57, %v713_v56 }
 0x1f7   :  { %429 = vmatpush.bf16.msra.mxu2 %v808_v58  ;;  %v806_v60 = vld [vmem:[#allocation4 + $0xa8] sm:$0xff]  ;;  %v805_v0 = vld [vmem:[#allocation4 + $0xa0] sm:$0xff]  ;;  %v804_v51 = vld [vmem:[#allocation4 + $0x98] sm:$0xff] }
 0x1f8   :  { %v803_v61 = vld [vmem:[#allocation4 + $0x90] sm:$0xff]  ;;  %v802_v62 = vld [vmem:[#allocation4 + $0x88] sm:$0xff]  ;;  %v801_v63 = vld [vmem:[#allocation4 + $0x80] sm:$0xff] }
 0x1fb   :  { %430 = vmatpush.bf16.msra.mxu2 %v807_v59 }
 0x1ff   :  { %431 = vmatpush.bf16.msra.mxu2 %v806_v60 }
 0x203   :  { %432 = vmatpush.bf16.msra.mxu2 %v805_v0 }
 0x207   :  { %433 = vmatpush.bf16.msra.mxu2 %v804_v51 }
 0x20b   :  { %434 = vmatpush.bf16.msra.mxu2 %v803_v61 }
 0x20f   :  { %435 = vmatpush.bf16.msra.mxu2 %v802_v62 }
 0x213   :  { %436 = vmatpush.bf16.msra.mxu2 %v801_v63 }
 0x216   :  { %437 = vmatmul.bf16.vlgmr.msra.gmra.mxu2 %v714_v1 }
 0x299   :  { %v438_v2 = vpop.f32.mrf.mxu2 }
 0x2a1   :  { %v440_v3 = vpop.f32.mrf.mxu2 }
 0x2a2   :  { %v443_v4 = vadd.f32 %v440_v3, %v438_v2 }
 0x2a4   :  { %v444_v5 = vrot.slane %v443_v4, 4 }
 0x2a6   :  { %v445_v6 = vadd.f32 %v444_v5, %v443_v4 }
 0x2a8   :  { %v446_v7 = vrot.slane %v445_v6, 2 }
 0x2aa   :  { %v447_v8 = vadd.f32 %v446_v7, %v445_v6 }
 0x2ac   :  { %v448_v9 = vrot.slane %v447_v8, 1 }
 0x2ae   :  { %v449_v10 = vadd.f32 %v448_v9, %v447_v8 }
 0x2b0   :  { %v450_v11 = vmul.f32 %v449_v10, %v1036_v26 }
 0x2b2   :  { %v451_v12 = vsub.f32 %v438_v2, %v450_v11  ;;  %v452_v13 = vsub.f32 %v440_v3, %v450_v11  ;;  %v474_v32 = vsub.f32 0.0, %v450_v11 }
 0x2b4   :  { %v453_v14 = vmul.f32 %v451_v12, %v451_v12  ;;  %v454_v15 = vmul.f32 %v452_v13, %v452_v13 }
 0x2b6   :  { %v455_v16 = vadd.f32 %v454_v15, %v453_v14 }
 0x2b8   :  { %v456_v17 = vrot.slane %v455_v16, 4 }
 0x2ba   :  { %v457_v18 = vadd.f32 %v456_v17, %v455_v16 }
 0x2bc   :  { %v458_v19 = vrot.slane %v457_v18, 2 }
 0x2be   :  { %v459_v20 = vadd.f32 %v458_v19, %v457_v18 }
 0x2c0   :  { %v460_v21 = vrot.slane %v459_v20, 1 }
 0x2c2   :  { %v461_v22 = vadd.f32 %v460_v21, %v459_v20 }
 0x2c4   :  { %v462_v23 = vmul.f32 %v461_v22, %v1036_v26 }
 0x2c6   :  { %v463_v24 = vadd.f32 1e-05, %v462_v23 }
 0x2c8   :  { %840 = vrsqrt.f32 %v463_v24  ;;  %vm470_vm8 = vweird.f32 %v463_v24 }
 0x2ce   :  { %v841_v25 = vpop.eup %840 }
 0x2cf   :  { %v465_v27 = vmul.f32 %v841_v25, %v463_v24  ;;  %vm471_vm7 = vweird.f32 %v841_v25 }
 0x2d0   :  { %vm472_vm9 = vmor %vm470_vm8, %vm471_vm7 }
 0x2d1   :  { %v466_v28 = vmul.f32 %v841_v25, %v465_v27 }
 0x2d3   :  { %v467_v29 = vmul.f32 0.5, %v466_v28 }
 0x2d5   :  { %v468_v30 = vsub.f32 1.5, %v467_v29 }
 0x2d7   :  { %v469_v31 = vmul.f32 %v841_v25, %v468_v30 }
 0x2d9   :  { %v473_v33 = vsel %vm472_vm9, %v841_v25, %v469_v31 }
 0x2da   :  { %v475_v34 = vmul.f32 %v474_v32, %v473_v33  ;;  %v476_v35 = vmul.f32 %v473_v33, %v438_v2  ;;  %v477_v36 = vmul.f32 %v473_v33, %v440_v3 }
 0x2dc   :  { %v478_v37 = vadd.f32 %v476_v35, %v475_v34  ;;  %v479_v38 = vadd.f32 %v477_v36, %v475_v34 }
 0x2de   :  { %480 = vst [vmem:[#allocation6] sm:$0xff] %v478_v37 }
 0x2df   :  { %481 = vst [vmem:[#allocation6 + $0x10] sm:$0xff] %v479_v38 }
 0x2e0   :  { %970 = dma.done.wait [#allocation5], 1024 }
 0x2e1   :  { %971 = vsyncadd [#allocation5], 4294966272  ;;  %v816_v39 = vld [vmem:[#allocation4 + $0x38] sm:$0xff]  ;;  %v815_v40 = vld [vmem:[#allocation4 + $0x30] sm:$0xff]  ;;  %s978_s4 = smov [#allocation6]   ;;  %s607_s17 = sshll.u32 %s1066_s5, 4  ;;  %s608_s17 = int_to_ptr.hbm [resolvable:$true] %s607_s17 }
 0x2e2   :  { %548 = vmatpush.bf16.msra.mxu3 %v816_v39  ;;  %v814_v41 = vld [vmem:[#allocation4 + $0x28] sm:$0xff]  ;;  %v813_v42 = vld [vmem:[#allocation4 + $0x20] sm:$0xff]  ;;  %v812_v43 = vld [vmem:[#allocation4 + $0x18] sm:$0xff]  ;;  %s605_s14 = sshll.u32 %s978_s4, 4  ;;  %s979_s18 = smov 256   ;;  %s606_s14 = int_to_ptr.vmem [resolvable:$true] %s605_s14 }
 0x2e3   :  { %v811_v44 = vld [vmem:[#allocation4 + $0x10] sm:$0xff]  ;;  %v810_v45 = vld [vmem:[#allocation4 + $0x8] sm:$0xff]  ;;  %v809_v46 = vld [vmem:[#allocation4] sm:$0xff]  ;;  %s980_s19 = smov 16  }
 0x2e6   :  { %549 = vmatpush.bf16.msra.mxu3 %v815_v40 }
 0x2ea   :  { %550 = vmatpush.bf16.msra.mxu3 %v814_v41 }
 0x2ee   :  { %551 = vmatpush.bf16.msra.mxu3 %v813_v42 }
 0x2f2   :  { %552 = vmatpush.bf16.msra.mxu3 %v812_v43 }
 0x2f6   :  { %553 = vmatpush.bf16.msra.mxu3 %v811_v44 }
 0x2fa   :  { %554 = vmatpush.bf16.msra.mxu3 %v810_v45 }
 0x2fe   :  { %555 = vmatpush.bf16.msra.mxu3 %v809_v46 }
 0x301   :  { %556 = vmatmul.bf16.vlgmr.msra.gmra.mxu3 %v714_v1 }
 0x384   :  { %v557_v47 = vpop.f32.mrf.mxu3 }
 0x38c   :  { %v559_v48 = vpop.f32.mrf.mxu3 }
 0x38d   :  { %v562_v49 = vadd.f32 %v559_v48, %v557_v47 }
 0x38f   :  { %v563_v50 = vrot.slane %v562_v49, 4 }
 0x391   :  { %v564_v52 = vadd.f32 %v563_v50, %v562_v49 }
 0x393   :  { %v565_v53 = vrot.slane %v564_v52, 2 }
 0x395   :  { %v566_v54 = vadd.f32 %v565_v53, %v564_v52 }
 0x397   :  { %v567_v55 = vrot.slane %v566_v54, 1 }
 0x399   :  { %v568_v56 = vadd.f32 %v567_v55, %v566_v54 }
 0x39b   :  { %v569_v57 = vmul.f32 %v568_v56, %v1036_v26 }
 0x39d   :  { %v570_v58 = vsub.f32 %v557_v47, %v569_v57  ;;  %v571_v59 = vsub.f32 %v559_v48, %v569_v57  ;;  %v593_v12 = vsub.f32 0.0, %v569_v57 }
 0x39f   :  { %v572_v60 = vmul.f32 %v570_v58, %v570_v58  ;;  %v573_v0 = vmul.f32 %v571_v59, %v571_v59 }
 0x3a1   :  { %v574_v51 = vadd.f32 %v573_v0, %v572_v60 }
 0x3a3   :  { %v575_v61 = vrot.slane %v574_v51, 4 }
 0x3a5   :  { %v576_v62 = vadd.f32 %v575_v61, %v574_v51 }
 0x3a7   :  { %v577_v63 = vrot.slane %v576_v62, 2 }
 0x3a9   :  { %v578_v1 = vadd.f32 %v577_v63, %v576_v62 }
 0x3ab   :  { %v579_v2 = vrot.slane %v578_v1, 1 }
 0x3ad   :  { %v580_v3 = vadd.f32 %v579_v2, %v578_v1 }
 0x3af   :  { %v581_v4 = vmul.f32 %v580_v3, %v1036_v26 }
 0x3b1   :  { %v582_v5 = vadd.f32 1e-05, %v581_v4 }
 0x3b3   :  { %842 = vrsqrt.f32 %v582_v5  ;;  %vm589_vm11 = vweird.f32 %v582_v5 }
 0x3b9   :  { %v843_v6 = vpop.eup %842 }
 0x3ba   :  { %v584_v7 = vmul.f32 %v843_v6, %v582_v5  ;;  %vm590_vm10 = vweird.f32 %v843_v6 }
 0x3bb   :  { %vm591_vm12 = vmor %vm589_vm11, %vm590_vm10 }
 0x3bc   :  { %v585_v8 = vmul.f32 %v843_v6, %v584_v7 }
 0x3be   :  { %v586_v9 = vmul.f32 0.5, %v585_v8 }
 0x3c0   :  { %v587_v10 = vsub.f32 1.5, %v586_v9 }
 0x3c2   :  { %v588_v11 = vmul.f32 %v843_v6, %v587_v10 }
 0x3c4   :  { %v592_v13 = vsel %vm591_vm12, %v843_v6, %v588_v11 }
 0x3c5   :  { %v594_v26 = vmul.f32 %v593_v12, %v592_v13  ;;  %v595_v14 = vmul.f32 %v592_v13, %v557_v47  ;;  %v596_v15 = vmul.f32 %v592_v13, %v559_v48 }
 0x3c7   :  { %v597_v16 = vadd.f32 %v595_v14, %v594_v26  ;;  %v598_v17 = vadd.f32 %v596_v15, %v594_v26 }
 0x3c9   :  { %599 = vst [vmem:[#allocation6 + $0x8] sm:$0xff] %v597_v16 }
 0x3ca   :  { %600 = vst [vmem:[#allocation6 + $0x18] sm:$0xff] %v598_v17 }
 0x3cb   :  { %613 = dma.vmem_to_hbm [thread:$0]  %s606_s14, 512, %s608_s17, [#allocation7], %s979_s18, %s979_s18, %s980_s19  }
 0x3cc   :  { %972 = dma.done.wait [#allocation7], 512  }
 0x3cd   :  { %973 = vsyncadd [#allocation7], 4294966784 }
 0x3ce   :  { %618 = vsyncpa [#allocation7], 1 }
 0x3cf   :  { %619 = vsyncmov [#allocation5] }
 0x3d2   :  { %s620_s20 = vpop.sfrf %619 }
 0x3d3   :  { %p779_p0 = scmp.ne.s32.totalorder %s620_s20, 0 }
 0x3d5   :  { %624 = shalt.err (%p779_p0)  }
 0x3d6   :  { %626 = vsyncmov [#allocation5 + $0x1] }
 0x3d9   :  { %s627_s5 = vpop.sfrf %626 }
 0x3da   :  { %p780_p1 = scmp.ne.s32.totalorder %s627_s5, 0 }
 0x3dc   :  { %631 = shalt.err (%p780_p1)  }
 0x3dd   :  { %633 = vsyncmov [#allocation5 + $0x2] }
 0x3e0   :  { %s634_s21 = vpop.sfrf %633 }
 0x3e1   :  { %p781_p2 = scmp.ne.s32.totalorder %s634_s21, 0 }
 0x3e3   :  { %638 = shalt.err (%p781_p2)  }

</bundles_post_ra>
